<compile_context>
chip_gen: v6e
topology: v6e:2x2x1
jax: 0.10.0
libtpu: 0.0.40
codegen_flags: <defaults>
</compile_context>

<pallas_src>
import functools

import jax
import jax.numpy as jnp
from jax.experimental import pallas as pl
from jax.experimental.pallas import tpu as pltpu


# ----------------------------------------------------------------------------
# Kernels
# ----------------------------------------------------------------------------
def _se_fused_kernel(x_ref, w1_ref, w2_ref, o_ref, *, inv_hw):
    """Single-pass SE: whole (C, HW) slab per batch element resident in VMEM."""
    x = x_ref[0]                                                   # (C, HW) native dtype
    # squeeze: f32-accumulated mean over spatial lanes -> (C, 1) column
    y = jnp.sum(x, axis=1, keepdims=True, dtype=jnp.float32) * inv_hw
    # excite: FC -> ReLU -> FC -> sigmoid (column-form mat-vecs; FLOPs are noise)
    h = jnp.maximum(jnp.dot(w1_ref[...], y, preferred_element_type=jnp.float32), 0.0)
    s = jax.nn.sigmoid(jnp.dot(w2_ref[...], h, preferred_element_type=jnp.float32))
    # scale + leaky_relu(0.1) in native dtype; (C, 1) broadcasts over lanes
    out = x * s.astype(x.dtype)
    o_ref[0] = jnp.where(out >= 0, out, 0.1 * out).astype(o_ref.dtype)


def _se_squeeze_excite_kernel(x_ref, w1_ref, w2_ref, s_ref, acc_ref, *, inv_hw):
    """Pass 1 of tiled path: accumulate channel sums over HW tiles, then FCs."""
    t = pl.program_id(1)

    @pl.when(t == 0)
    def _():
        acc_ref[...] = jnp.zeros_like(acc_ref)

    acc_ref[...] += jnp.sum(x_ref[0], axis=1, keepdims=True, dtype=jnp.float32)

    @pl.when(t == pl.num_programs(1) - 1)
    def _():
        y = acc_ref[...] * inv_hw                                  # (C, 1) f32
        h = jnp.maximum(jnp.dot(w1_ref[...], y, preferred_element_type=jnp.float32), 0.0)
        s_ref[0] = jax.nn.sigmoid(jnp.dot(w2_ref[...], h, preferred_element_type=jnp.float32))


def _se_scale_kernel(x_ref, s_ref, o_ref):
    """Pass 2 of tiled path: out = leaky_relu(x * s) per HW tile."""
    x = x_ref[0]                                                   # (C, THW)
    out = x * s_ref[0].astype(x.dtype)                             # (C, 1) bcast over lanes
    o_ref[0] = jnp.where(out >= 0, out, 0.1 * out).astype(o_ref.dtype)


# ----------------------------------------------------------------------------
# Wrapper
# ----------------------------------------------------------------------------
def _vmem_capacity_bytes():
    try:
        cap = int(pltpu.get_tpu_info().vmem_capacity_bytes)
        if cap > 0:
            return cap
    except Exception:
        pass
    return 64 << 20  # conservative (v7x physical)


def se_layer(x, w1, w2, *, hw_tile=None, vmem_limit_bytes=None):
    """SE forward. x: (B, C, H, W); w1: (C//r, C) = fc1.weight; w2: (C, C//r) = fc2.weight."""
    B, C, H, W = x.shape
    HW = H * W
    Cr = w1.shape[0]
    itemsize = jnp.dtype(x.dtype).itemsize
    inv_hw = 1.0 / float(HW)

    # Weights stay in their PyTorch orientation (column-form mat-vecs in-kernel).
    w1_f = jnp.asarray(w1, jnp.float32)                            # (Cr, C)
    w2_f = jnp.asarray(w2, jnp.float32)                            # (C, Cr)

    # Free view: merge the two contiguous trailing dims. HW lands on lanes.
    x_r = x.reshape(B, C, HW)                                      # (B, C, HW)

    if vmem_limit_bytes is None:
        cap = _vmem_capacity_bytes()
        vmem_limit_bytes = min((cap * 3) // 4, 100 << 20)

    weight_bytes = 2 * 2 * C * Cr * 4                              # both weights, double-buffered
    fused_resident = 4 * HW * C * itemsize + weight_bytes          # 2 in + 2 out buffers
    use_fused = hw_tile is None and fused_resident <= int(0.8 * vmem_limit_bytes)

    if use_fused:
        cost = pl.CostEstimate(
            flops=int(4 * B * C * HW + 4 * B * C * Cr),
            transcendentals=int(B * C),
            bytes_accessed=int(2 * B * C * HW * itemsize + 2 * C * Cr * 4),
        )
        out_r = pl.pallas_call(
            functools.partial(_se_fused_kernel, inv_hw=inv_hw),
            out_shape=jax.ShapeDtypeStruct((B, C, HW), x.dtype),
            grid_spec=pltpu.PrefetchScalarGridSpec(
                num_scalar_prefetch=0,
                grid=(B,),
                in_specs=[
                    pl.BlockSpec((1, C, HW), lambda b: (b, 0, 0)),
                    pl.BlockSpec((Cr, C), lambda b: (0, 0)),
                    pl.BlockSpec((C, Cr), lambda b: (0, 0)),
                ],
                out_specs=pl.BlockSpec((1, C, HW), lambda b: (b, 0, 0)),
            ),
            compiler_params=pltpu.CompilerParams(
                dimension_semantics=("parallel",),
                vmem_limit_bytes=vmem_limit_bytes),
            cost_estimate=cost,
        )(x_r, w1_f, w2_f)
        return out_r.reshape(B, C, H, W)

    # ---- two-pass HW-tiled path (large slabs / small-VMEM chips) -----------
    if hw_tile is None:
        lanes = (vmem_limit_bytes // 8) // max(1, C * itemsize)    # 4 bufs + headroom
        hw_tile = max(128, (min(HW, lanes) // 128) * 128)
    hw_tile = max(128, (int(hw_tile) // 128) * 128)                # lane axis: multiple of 128

    T = pl.cdiv(HW, hw_tile)
    HW_pad = T * hw_tile
    if HW_pad != HW:
        # Zero-pad spatial lanes: zeros do not perturb the channel sums; padded
        # output lanes are sliced off below. (Rare fallback; costs one extra pass.)
        x_r = jnp.pad(x_r, ((0, 0), (0, 0), (0, HW_pad - HW)))

    # Pass 1: squeeze (channel sums over HW tiles) + excite -> s: (B, C, 1) f32
    s = pl.pallas_call(
        functools.partial(_se_squeeze_excite_kernel, inv_hw=inv_hw),
        out_shape=jax.ShapeDtypeStruct((B, C, 1), jnp.float32),
        grid_spec=pltpu.PrefetchScalarGridSpec(
            num_scalar_prefetch=0,
            grid=(B, T),
            in_specs=[
                pl.BlockSpec((1, C, hw_tile), lambda b, t: (b, 0, t)),
                pl.BlockSpec((Cr, C), lambda b, t: (0, 0)),
                pl.BlockSpec((C, Cr), lambda b, t: (0, 0)),
            ],
            out_specs=pl.BlockSpec((1, C, 1), lambda b, t: (b, 0, 0)),
            scratch_shapes=[pltpu.VMEM((C, 1), jnp.float32)],
        ),
        compiler_params=pltpu.CompilerParams(
            dimension_semantics=("parallel", "arbitrary"),
            vmem_limit_bytes=vmem_limit_bytes),
        cost_estimate=pl.CostEstimate(
            flops=int(B * C * HW_pad + 4 * B * C * Cr),
            transcendentals=int(B * C),
            bytes_accessed=int(B * HW_pad * C * itemsize + 2 * C * Cr * 4 + B * C * 4)),
    )(x_r, w1_f, w2_f)

    # Pass 2: out = leaky_relu(x * s); both grid axes parallel (megacore @ B=1).
    out_r = pl.pallas_call(
        _se_scale_kernel,
        out_shape=jax.ShapeDtypeStruct((B, C, HW_pad), x.dtype),
        grid_spec=pltpu.PrefetchScalarGridSpec(
            num_scalar_prefetch=0,
            grid=(B, T),
            in_specs=[
                pl.BlockSpec((1, C, hw_tile), lambda b, t: (b, 0, t)),
                pl.BlockSpec((1, C, 1), lambda b, t: (b, 0, 0)),
            ],
            out_specs=pl.BlockSpec((1, C, hw_tile), lambda b, t: (b, 0, t)),
        ),
        compiler_params=pltpu.CompilerParams(
            dimension_semantics=("parallel", "parallel"),
            vmem_limit_bytes=vmem_limit_bytes),
        cost_estimate=pl.CostEstimate(
            flops=int(3 * B * C * HW_pad),
            transcendentals=0,
            bytes_accessed=int(2 * B * HW_pad * C * itemsize + B * C * 4)),
    )(x_r, s)

    if HW_pad != HW:
        out_r = out_r[:, :, :HW]
    return out_r.reshape(B, C, H, W)


# ----------------------------------------------------------------------------
# Pure-JAX reference mirroring the PyTorch forward
# ----------------------------------------------------------------------------
def se_layer_ref(x, w1, w2):
    y = jnp.mean(x, axis=(2, 3))                                   # (B, C)
    h = jnp.maximum(y @ w1.T, 0.0)                                 # (B, C//r)
    s = jax.nn.sigmoid(h @ w2.T)                                   # (B, C)
    out = x * s[:, :, None, None]
    return jnp.where(out >= 0.0, out, 0.1 * out)


if __name__ == "__main__":
    key = jax.random.PRNGKey(0)
    kx, k1, k2, kx2 = jax.random.split(key, 4)

    # Case 1: fused single-pass path (whole (C, HW) slab per batch element).
    B, C, H, W = 2, 4, 16, 16
    Cr = C // 2
    x = jax.random.normal(kx, (B, C, H, W), dtype=jnp.float32)
    w1 = jax.random.normal(k1, (Cr, C), dtype=jnp.float32) * 0.5   # fc1.weight
    w2 = jax.random.normal(k2, (C, Cr), dtype=jnp.float32) * 0.5   # fc2.weight

    out = jax.block_until_ready(se_layer(x, w1, w2))
    ref = se_layer_ref(x, w1, w2)
    assert out.shape == (B, C, H, W)
    assert jnp.allclose(out, ref, atol=1e-5, rtol=1e-5), "fused path mismatch"

    # Case 2: two-pass HW-tiled path (forced tile; HW=256 -> 2 tiles of 128).
    out_t = jax.block_until_ready(se_layer(x, w1, w2, hw_tile=128))
    assert jnp.allclose(out_t, ref, atol=1e-5, rtol=1e-5), "tiled path mismatch"

    # Case 3: tiled path with non-divisible HW (HW=100 padded to 128), B=1.
    B2, C2 = 1, 8
    Cr2 = C2 // 2
    x2 = jax.random.normal(kx2, (B2, C2, 10, 10), dtype=jnp.float32)
    w1b = jax.random.normal(k1, (Cr2, C2), dtype=jnp.float32) * 0.5
    w2b = jax.random.normal(k2, (C2, Cr2), dtype=jnp.float32) * 0.5
    out2 = jax.block_until_ready(se_layer(x2, w1b, w2b, hw_tile=128))
    ref2 = se_layer_ref(x2, w1b, w2b)
    assert jnp.allclose(out2, ref2, atol=1e-5, rtol=1e-5), "padded tiled path mismatch"

    print("KERNEL_OK")
</pallas_src>

<mosaic_0001>
module attributes {stable_mosaic.version = 11 : i64} {
  func.func @_se_fused_kernel(%arg0: i32, %arg1: memref<1x4x256xf32, #tpu.memory_space<vmem>>, %arg2: memref<2x4xf32, #tpu.memory_space<vmem>>, %arg3: memref<4x2xf32, #tpu.memory_space<vmem>>, %arg4: memref<1x4x256xf32, #tpu.memory_space<vmem>>) attributes {dimension_semantics = [#tpu.dimension_semantics<parallel>], iteration_bounds = array<i64: 2>, scalar_prefetch = 0 : i64, scratch_operands = 0 : i64, tpu.core_type = #tpu.core_type<tc>, window_params = [{transform_indices = @transform_0, window_bounds = array<i64: 1, 4, 256>}, {pipeline_mode = #tpu.pipeline_mode<synchronous>, transform_indices = @transform_1, window_bounds = array<i64: 2, 4>}, {pipeline_mode = #tpu.pipeline_mode<synchronous>, transform_indices = @transform_2, window_bounds = array<i64: 4, 2>}, {transform_indices = @transform_3, window_bounds = array<i64: 1, 4, 256>}]} {
    %c0 = arith.constant 0 : index
    %c0_0 = arith.constant 0 : index
    %c0_1 = arith.constant 0 : index
    %0 = vector.load %arg1[%c0, %c0_0, %c0_1] : memref<1x4x256xf32, #tpu.memory_space<vmem>>, vector<1x4x256xf32>
    %1 = vector.shape_cast %0 : vector<1x4x256xf32> to vector<4x256xf32>
    %cst = arith.constant dense<0.000000e+00> : vector<4xf32>
    %2 = vector.multi_reduction <add>, %1, %cst [1] : vector<4x256xf32> to vector<4xf32>
    %3 = vector.shape_cast %2 : vector<4xf32> to vector<4x1xf32>
    %cst_2 = arith.constant 3.906250e-03 : f32
    %4 = vector.broadcast %cst_2 : f32 to vector<4x1xf32>
    %5 = arith.mulf %3, %4 : vector<4x1xf32>
    %c0_3 = arith.constant 0 : index
    %c0_4 = arith.constant 0 : index
    %6 = vector.load %arg2[%c0_3, %c0_4] : memref<2x4xf32, #tpu.memory_space<vmem>>, vector<2x4xf32>
    %cst_5 = arith.constant dense<0.000000e+00> : vector<2x1xf32>
    %7 = tpu.matmul %6, %5, %cst_5 {dimension_numbers = #tpu.dot_dimension_numbers<[1], [0], [0], [1], [0, 0, 1, 1], [], []>} : vector<2x4xf32>, vector<4x1xf32>, vector<2x1xf32> -> vector<2x1xf32>
    %cst_6 = arith.constant 0.000000e+00 : f32
    %8 = vector.broadcast %cst_6 : f32 to vector<2x1xf32>
    %9 = arith.maximumf %7, %8 : vector<2x1xf32>
    %c0_7 = arith.constant 0 : index
    %c0_8 = arith.constant 0 : index
    %10 = vector.load %arg3[%c0_7, %c0_8] : memref<4x2xf32, #tpu.memory_space<vmem>>, vector<4x2xf32>
    %cst_9 = arith.constant dense<0.000000e+00> : vector<4x1xf32>
    %11 = tpu.matmul %10, %9, %cst_9 {dimension_numbers = #tpu.dot_dimension_numbers<[1], [0], [0], [1], [0, 0, 1, 1], [], []>} : vector<4x2xf32>, vector<2x1xf32>, vector<4x1xf32> -> vector<4x1xf32>
    %12 = arith.negf %11 : vector<4x1xf32>
    %13 = math.exp %12 : vector<4x1xf32>
    %cst_10 = arith.constant 1.000000e+00 : f32
    %14 = vector.broadcast %cst_10 : f32 to vector<4x1xf32>
    %15 = arith.addf %14, %13 : vector<4x1xf32>
    %16 = arith.divf %14, %15 : vector<4x1xf32>
    %17 = vector.broadcast %16 : vector<4x1xf32> to vector<4x256xf32>
    %18 = arith.mulf %1, %17 : vector<4x256xf32>
    %cst_11 = arith.constant 0.000000e+00 : f32
    %19 = vector.broadcast %cst_11 : f32 to vector<4x256xf32>
    %20 = arith.cmpf oge, %18, %19 : vector<4x256xf32>
    %cst_12 = arith.constant 1.000000e-01 : f32
    %21 = vector.broadcast %cst_12 : f32 to vector<4x256xf32>
    %22 = arith.mulf %21, %18 : vector<4x256xf32>
    %23 = arith.select %20, %18, %22 : vector<4x256xi1>, vector<4x256xf32>
    %c0_13 = arith.constant 0 : index
    %c0_14 = arith.constant 0 : index
    %c0_15 = arith.constant 0 : index
    %24 = vector.load %arg4[%c0_13, %c0_14, %c0_15] : memref<1x4x256xf32, #tpu.memory_space<vmem>>, vector<1x4x256xf32>
    %25 = vector.shape_cast %24 : vector<1x4x256xf32> to vector<4x256xf32>
    %26 = vector.shape_cast %23 : vector<4x256xf32> to vector<1x4x256xf32>
    tpu.vector_store %arg4[%c0_13, %c0_14, %c0_15], %26 {strides = array<i32>} : memref<1x4x256xf32, #tpu.memory_space<vmem>>, vector<1x4x256xf32>,
    return
  }
  func.func @transform_0(%arg0: i32) -> (i32, i32, i32) {
    %c0_i32 = arith.constant 0 : i32
    %c0_i32_0 = arith.constant 0 : i32
    %c0_i32_1 = arith.constant 0 : i32
    return %arg0, %c0_i32, %c0_i32_0 : i32, i32, i32
  }
  func.func @transform_1(%arg0: i32) -> (i32, i32) {
    %c0_i32 = arith.constant 0 : i32
    %c0_i32_0 = arith.constant 0 : i32
    %c0_i32_1 = arith.constant 0 : i32
    return %c0_i32, %c0_i32_0 : i32, i32
  }
  func.func @transform_2(%arg0: i32) -> (i32, i32) {
    %c0_i32 = arith.constant 0 : i32
    %c0_i32_0 = arith.constant 0 : i32
    %c0_i32_1 = arith.constant 0 : i32
    return %c0_i32, %c0_i32_0 : i32, i32
  }
  func.func @transform_3(%arg0: i32) -> (i32, i32, i32) {
    %c0_i32 = arith.constant 0 : i32
    %c0_i32_0 = arith.constant 0 : i32
    %c0_i32_1 = arith.constant 0 : i32
    return %arg0, %c0_i32, %c0_i32_0 : i32, i32, i32
  }
}

</mosaic_0001>

<bundles_post_ra>
// kernel: tpu_custom_call.1
= control target key start
LH: loop header
LB: loop body
LE: loop exit
PB: predicated region body
PF: predicated region fallthrough
CT: control target
= control target key end

     0   :  { %8 = vsyncpa [#allocation3], 0  ;;  %s835_s0 = inlined_call_operand.hbm [shape: f32[2,4,256], index: 0, kind: input, shape index: {}]   ;;  %s836_s1 = inlined_call_operand.vmem [shape: f32[2,4], index: 1, kind: input, shape index: {}]   ;;  %s837_s2 = inlined_call_operand.vmem [shape: f32[4,2], index: 2, kind: input, shape index: {}]   ;;  %s838_s3 = inlined_call_operand.hbm [shape: f32[2,4,256], index: 3, kind: output, shape index: {}]  }
   0x1   :  { %10 = vsyncpa [#allocation3 + $0x1], 0 }
   0x2   :  { %11 = vsyncpa [#allocation4], 0 }
   0x3   :  { %13 = vsyncpa [#allocation4 + $0x1], 0  ;;  %s675_s12 = smov 0   ;;  %s677_s13 = smov 0  }
   0x4   :  { %s679_s14 = smov 0   ;;  %s681_s15 = smov 0  }
   0x5 LB: > { %s696_s16 = sadd.s32 4294967295, %s647_s15   ;;  %s464_s17 = sadd.s32 4294967294, %s647_s15   ;;  %s647_s15 = sphi %s681_s15, %s855_s15   ;;  %s643_s14 = sphi %s679_s14, %s854_s14   ;;  %s639_s13 = sphi %s677_s13, %s853_s13   ;;  %s635_s12 = sphi %s675_s12, %s852_s12  }
   0x6   : > { %s700_s18 = sadd.s32 1, %s647_s15   ;;  %s26_s19 = sadd.s32 1, %s643_s14 }
   0x7   : > { %s23_s20 = ssub.s32 %s647_s15, %s700_s18  ;;  %p33_p0 = scmp.ne.s32.totalorder %s643_s14, %s639_s13 }
   0x8   : > { %p24_p1 = scmp.eq.s32.totalorder %s23_s20, 0  ;;  %p34_p2 = scmp.eq.s32.totalorder %s647_s15, 0 }
   0x9   : > { %p39_p3 = scmp.ne.s32.totalorder %s639_s13, %s635_s12  ;;  %p40_p4 = scmp.eq.s32.totalorder %s696_s16, 0 }
   0xa   : > { %s712_s21 = scalar_select %p24_p1, %s643_s14, %s26_s19  }
   0xb   : > { %p714_p5 = por %p34_p2, %p33_p0  ;;  %p718_p6 = por %p40_p4, %p39_p3 }
   0xc   : > { %p105_p7 = scmp.eq.s32.totalorder %s696_s16, 1  ;;  %p111_p8 = scmp.eq.s32.totalorder %s464_s17, 1 }
   0xd   : > { %s842_s23 = scalar_select %p718_p6, 1, 0 }
   0xe   : > { %p511_p10 = scmp.lt.s32.totalorder %s647_s15, 2  ;;  %p725_p11 = por %p105_p7, %p33_p0 }
   0xf   : > { %p729_p12 = por %p111_p8, %p39_p3  ;;  %s137_s26 = sand.u32 1, %s643_s14  }
  0x10   : > { %s843_s24 = scalar_select %p725_p11, 1, 0 }
  0x11   : > { %s844_s25 = scalar_select %p729_p12, 1, 0 }
  0x12   : > { %s483_s27 = sshll.u32 %s647_s15, 7  ;;  %s467_s28 = sshll.u32 %s137_s26, 3 }
  0x13   : > { %s738_s4 = scalar_lea.hbm %s835_s0, %s483_s27  ;;  %s141_s5 = scalar_lea.vmem [#allocation2], %s467_s28 }
  0x14   : > { %s149_s6 = sshll.u32 %s141_s5, 4  ;;  %p742_p13 = pnand %p511_p10, %p714_p5  ;;  %s746_s6 = int_to_ptr.vmem [resolvable:$true] %s149_s6 }
  0x15   : > { %s138_s8 = scalar_lea.sflag [#allocation3], %s137_s26  ;;  %s555_s9 = scalar_lea.hbm %s738_s4, 128 }
  0x16   : > { %p556_p2 = scmp.ne.s32.totalorder %s738_s4, %s555_s9  ;;  %p557_p3 = pneg %p742_p13 }
  0x17   : > { %s560_s17 = scalar_lea.hbm %s835_s0, 256  ;;  %p561_p5 = scmp.lt.s32.totalorder %s738_s4, %s835_s0 }
  0x18   : > { %p558_p4 = pnand %p557_p3, %p556_p2  ;;  %p562_p8 = scmp.lt.s32.totalorder %s560_s17, %s555_s9 }
  0x1a   : > { %p559_p7 = pneg %p558_p4  ;;  %p563_p10 = por %p562_p8, %p561_p5 }
  0x1c   : > { %p564_p9 = pnand %p563_p10, %p559_p7 }
  0x1e   : > { %567 = shalt.err (!%p564_p9)
}
  0x1f   : > { %s568_s22 = scalar_lea.vmem %s746_s6, 128  ;;  %s649_s26 = smov [#allocation2]  }
  0x20   : > { %p569_p0 = scmp.ne.s32.totalorder %s746_s6, %s568_s22  ;;  %s573_s27 = sshll.u32 %s649_s26, 4  ;;  %s574_s27 = int_to_ptr.vmem [resolvable:$false] %s573_s27 }
  0x21   : > { %s575_s28 = scalar_lea.vmem %s574_s27, 256  ;;  %p576_p4 = scmp.lt.s32.totalorder %s746_s6, %s574_s27 }
  0x22   : > { %p571_p1 = pnand %p569_p0, %p557_p3  ;;  %p577_p12 = scmp.lt.s32.totalorder %s575_s28, %s568_s22 }
  0x24   : > { %p572_p2 = pneg %p571_p1  ;;  %p578_p11 = por %p577_p12, %p576_p4 }
  0x26   : > { %p579_p6 = pnand %p578_p11, %p572_p2 }
  0x28   : > { %582 = shalt.err (!%p579_p6)
}
  0x29   : > { %506 = dma.hbm_to_vmem [thread:$0]  (!%p742_p13), %s738_s4, 128, %s746_s6, %s138_s8  }
  0x2a   : > { %p846_p9 = scmp.lt.s32.totalorder %s647_s15, 3  ;;  %p847_p7 = scmp.ge.s32.totalorder %s647_s15, 1 }
  0x2c   : > { %p155_p0 = pnand %p847_p7, %p846_p9 }
  0x2d   : > { %s773_s29 = sand.u32 (!%p155_p0), 1, %s639_s13   ;;  %p848_p6 = scmp.ne.s32.totalorder (!%p155_p0), %s842_s23, 0 }
  0x2e   : > { %158 = sbr.rel (%p155_p0) target bundleno = 764 (0x2fc), region = 32  ;;  %s471_s30 = sshll.u32 (!%p155_p0), %s773_s29, 3 }
  0x2f   : > { %s161_s5 = scalar_lea.sflag (!%p155_p0), [#allocation3], %s773_s29  ;;  %s164_s7 = scalar_lea.vmem (!%p155_p0), [#allocation2], %s471_s30 }
  0x33   : > { %626 = dma.done.wait (%p848_p6), %s161_s5, 128  }
  0x34   : > { %628 = vsyncadd (%p848_p6), %s161_s5, 4294967168  ;;  %vm191_vm0 = vcmask 1043456   ;;  %v187_v0 = vld [vmem:[%s164_s7] sm:$0xff]  ;;  %v650_v5 = vmov 0.0   ;;  %vm651_vm1 = vmmov 0   ;;  %vm199_vm2 = vcmask 31744  }
  0x35   : > { %v189_v1 = vcombine.high %v187_v0, %v187_v0  ;;  %v192_v2 = vsel %vm191_vm0, %v187_v0, 0.0  ;;  %489 = vmatprep.subr.mxu0 %v650_v5  ;;  %494 = vmatprep.subr.mxu1 %v650_v5  ;;  %v198_v8 = vld [vmem:[%s836_s1] sm:$0x3]  ;;  %vm282_vm3 = vcmask 1041408   ;;  %vm278_vm4 = vcmask 15360   ;;  %s484_s9 = sshll.u32 %s696_s16, 7 }
  0x36   : > { %491 = vmatprep.mubr.msk.f32.mxu0 %vm651_vm1, %v650_v5  ;;  %496 = vmatprep.mubr.msk.f32.mxu1 %vm651_vm1, %v650_v5  ;;  %v277_v11 = vld [vmem:[%s837_s2] sm:$0xf]  ;;  %v652_v13 = vmov 0   ;;  %v653_v20 = vmov 839922192   ;;  %v369_v22 = vlaneseq  ;;  %s186_s10 = scalar_lea.vmem [#allocation5], %s471_s30  ;;  %s798_s20 = scalar_lea.hbm %s838_s3, %s484_s9 }
  0x37   : > { %v193_v3 = vsel %vm191_vm0, %v189_v1, 0.0  ;;  %549 = vset.pattern.permute.xlu0 %v652_v13  ;;  %v367_v21 = vunpack.c.l.s4 %v653_v20  ;;  %s394_s11 = sshll.u32 %s186_s10, 4  ;;  %s380_s22 = scalar_lea.sflag [#allocation4], %s773_s29  ;;  %s395_s11 = int_to_ptr.vmem [resolvable:$true] %s394_s11 }
  0x38   : > { %v194_v4 = vadd.f32 %v193_v3, %v192_v2  ;;  %v370_v24 = vshrl.u32 %v369_v22, 7  ;;  %s583_s26 = scalar_lea.vmem %s395_s11, 128  ;;  %p849_p12 = scmp.ne.s32.totalorder %s843_s24, 0 }
  0x39   : > { %v368_v23 = vunpack.c.0.s8 %v367_v21  ;;  %p584_p11 = scmp.ne.s32.totalorder %s395_s11, %s583_s26  ;;  %s654_s16 = smov [#allocation5]  }
  0x3a   : > { %195 = vadd.xlane.f32.xlu0 %v194_v4  ;;  %s587_s27 = sshll.u32 %s654_s16, 4  ;;  %s588_s27 = int_to_ptr.vmem [resolvable:$false] %s587_s27 }
  0x3b   : > { %v371_v25 = vsub.s32 %v368_v23, %v370_v24  ;;  %p585_p13 = pnand %p584_p11, %p849_p12  ;;  %s589_s28 = scalar_lea.vmem %s588_s27, 256 }
  0x3c   : > { %p590_p3 = scmp.lt.s32.totalorder %s395_s11, %s588_s27  ;;  %p591_p5 = scmp.lt.s32.totalorder %s589_s28, %s583_s26 }
  0x3d   : > { %p586_p1 = pneg %p585_p13 }
  0x3e   : > { %p592_p8 = por %p591_p5, %p590_p3 }
  0x40   : > { %p593_p10 = pnand %p592_p8, %p586_p1 }
  0xc3   : > { %v196_v6 = vpop.xlane.xlu0 %195 }
  0xc4   : > { %v197_v7 = vmul.f32 0.00390625, %v196_v6 }
  0xc6   : > { %490 = vmatpush3.msk.msra.mxu0 %vm191_vm0, %v197_v7 }
  0xc7   : > { %492 = vmatmul.mubr.msk.f32.vlgmr.msra.gmra.mxu0 %vm199_vm2, %v198_v8 }
 0x187   : > { %v272_v9 = vpop.f32.mrf.mxu0 }
 0x188   : > { %v276_v10 = vmax.f32 %v272_v9, 0.0 }
 0x189   : > { %v493_v12 = vpop.f32.mrf.mxu0 }
 0x18a   : > { %495 = vmatpush3.msk.msra.mxu1 %vm282_vm3, %v276_v10 }
 0x18b   : > { %497 = vmatmul.mubr.msk.f32.vlgmr.msra.gmra.mxu1 %vm278_vm4, %v277_v11 }
 0x24b   : > { %v352_v14 = vpop.f32.mrf.mxu1 }
 0x24c   : > { %v477_v15 = vmul.f32 -1.442695, %v352_v14 }
 0x24d   : > { %v498_v16 = vpop.f32.mrf.mxu1 }
 0x24e   : > { %551 = vpow2.f32 %v477_v15 }
 0x25b   : > { %v552_v17 = vpop.eup %551 }
 0x25c   : > { %v359_v18 = vadd.f32 1.0, %v552_v17 }
 0x25e   : > { %553 = vrcp.f32 %v359_v18 }
 0x26b   : > { %v554_v19 = vpop.eup %553 }
 0x26c   : > { %364 = vperm.xlu0 %549, %v554_v19  }
 0x2e7   : > { %v365_v26 = vpop.permute.xlu0 %364 }
 0x2e8   : > { %v372_v27 = vrot.slane %v365_v26, %v371_v25 }
 0x2ea   : > { %v374_v28 = vmul.f32 %v372_v27, %v187_v0 }
 0x2ec   : > { %vm375_vm5 = vcmp.ge.f32.partialorder %v374_v28, 0.0  ;;  %v376_v29 = vmul.f32 0.1, %v374_v28 }
 0x2ee   : > { %v377_v30 = vsel %vm375_vm5, %v374_v28, %v376_v29 }
 0x2ef   : > { %378 = vst [vmem:[%s186_s10] sm:$0xff] %v377_v30 }
 0x2f0   : > { %596 = shalt.err (!%p593_p10)
}
 0x2f1   : > { %s597_s30 = scalar_lea.hbm %s798_s20, 128  ;;  %s601_s7 = scalar_lea.hbm %s838_s3, 256 }
 0x2f2   : > { %p598_p2 = scmp.ne.s32.totalorder %s798_s20, %s597_s30  ;;  %p602_p7 = scmp.lt.s32.totalorder %s798_s20, %s838_s3 }
 0x2f3   : > { %p603_p0 = scmp.lt.s32.totalorder %s601_s7, %s597_s30 }
 0x2f4   : > { %p599_p4 = pnand %p598_p2, %p849_p12 }
 0x2f5   : > { %p604_p6 = por %p603_p0, %p602_p7 }
 0x2f6   : > { %p600_p9 = pneg %p599_p4 }
 0x2f8   : > { %p605_p11 = pnand %p604_p6, %p600_p9 }
 0x2fa   : > { %608 = shalt.err (!%p605_p11)
}
 0x2fb   : > { %501 = dma.vmem_to_hbm [thread:$0]  (%p849_p12), %s395_s11, 128, %s798_s20, %s380_s22  }
 0x2fc PF: > { %s406_s6 = sand.u32 1, %s635_s12   ;;  %p850_p13 = scmp.ne.s32.totalorder %s844_s25, 0 }
 0x2fd   : > { %p851_p1 = scmp.ge.s32.totalorder %s647_s15, 2  ;;  %s407_s8 = scalar_lea.sflag [#allocation4], %s406_s6 }
 0x2ff   : > { %p508_p3 = pnand %p851_p1, %p850_p13 }
 0x301   : > { %p509_p5 = pneg %p508_p3 }
 0x303   : > { %630 = dma.done.wait (%p509_p5), %s407_s8, 128  }
 0x304   : > { %632 = vsyncadd (%p509_p5), %s407_s8, 4294967168  ;;  %p16_p8 = scmp.ge.s32.totalorder %s700_s18, 4   ;;  %s852_s12 = smov %s639_s13 }
 0x305   : > { %s853_s13 = smov %s643_s14  ;;  %s854_s14 = smov %s712_s21 }
 0x306   : > { %s855_s15 = smov %s700_s18  ;;  %18 = sbr.rel (!%p16_p8) target bundleno = 5 (0x5), region = 77 }
 0x30b   :  { %412 = vsyncpa [#allocation3], 1 }
 0x30c   :  { %414 = vsyncpa [#allocation3 + $0x1], 1 }
 0x30d   :  { %415 = vsyncpa [#allocation4], 1 }
 0x30e   :  { %417 = vsyncpa [#allocation4 + $0x1], 1 }

</bundles_post_ra>
